<compile_context>
chip_gen: v7x
topology: tpu7x:2x2x1
jax: 0.10.0
libtpu: 0.0.40
codegen_flags: <defaults>
</compile_context>

<pallas_src>
import jax
import jax.numpy as jnp
from jax.experimental import pallas as pl
from jax.experimental.pallas import tpu as pltpu


def _round_kernel(x_ref, o_ref):
    # Elementwise round-half-to-even on the current VMEM tile.
    o_ref[...] = jnp.round(x_ref[...])


_LANE = 128
_LANE_CANDIDATES = (2048, 1024, 512, 256, 128)  # wide, lane-dense slabs first


def _sublane_multiple(dtype):
    # Sublane packing requirement: 8 for 32-bit, 16 for 16-bit, 32 for 8-bit.
    itemsize = jnp.dtype(dtype).itemsize
    return max(8, 32 // max(int(itemsize), 1))


def stacked_sigmoid_forward(x, alpha=1.0, *, target_block_bytes=2 * 1024 * 1024):
    """Forward pass of StackedSigmoid: round(x).

    `alpha` is unused in the forward pass (it only affects the gradient
    estimator in the original module).
    """
    del alpha  # forward pass ignores alpha

    orig_shape = x.shape
    dtype = x.dtype
    itemsize = int(jnp.dtype(dtype).itemsize)
    sublane = _sublane_multiple(dtype)

    n = int(x.size)
    if n == 0:
        return x

    # ---- choose a lane-dense 2D view [rows, L]; avoid pad/slice when possible.
    if n % _LANE == 0:
        lane_opts = [c for c in _LANE_CANDIDATES if n % c == 0]
        # Prefer the widest L that still leaves at least `sublane` rows.
        wide = [c for c in lane_opts if (n // c) >= sublane]
        L = wide[0] if wide else lane_opts[0]
        padded_n = n
    else:
        # Ragged tail: minimal pad to a multiple of 128 (zeros round to zero
        # and are sliced off below).
        L = _LANE
        padded_n = pl.cdiv(n, _LANE) * _LANE

    rows = padded_n // L

    # ---- block sizing: ~target_block_bytes, sublane-aligned, capped at rows.
    tile_rows = max(sublane,
                    ((target_block_bytes // itemsize) // L) // sublane * sublane)
    if tile_rows >= rows:
        tile_rows = rows  # full-extent block (only for small tensors)

    grid = (pl.cdiv(rows, tile_rows),)

    flat = x.reshape(-1)
    if padded_n != n:
        flat = jnp.pad(flat, (0, padded_n - n))
    x2d = flat.reshape(rows, L)

    out2d = pl.pallas_call(
        _round_kernel,
        out_shape=jax.ShapeDtypeStruct((rows, L), dtype),
        grid_spec=pltpu.PrefetchScalarGridSpec(
            num_scalar_prefetch=0,
            grid=grid,
            in_specs=[pl.BlockSpec((tile_rows, L), lambda i: (i, 0))],
            out_specs=pl.BlockSpec((tile_rows, L), lambda i: (i, 0)),
        ),
        # Round in place: no second full-size HBM buffer.
        input_output_aliases={0: 0},
        # Advisory: this is a pure streaming / HBM-bound op.
        cost_estimate=pl.CostEstimate(
            flops=padded_n,
            transcendentals=0,
            bytes_accessed=2 * padded_n * itemsize),
        compiler_params=pltpu.CompilerParams(
            dimension_semantics=("parallel",)),
    )(x2d)

    if padded_n != n:
        return out2d.reshape(-1)[:n].reshape(orig_shape)
    return out2d.reshape(orig_shape)


class StackedSigmoidJax:
    """JAX/Pallas equivalent of the PyTorch StackedSigmoid module (forward)."""

    def __init__(self, alpha=1.0):
        # Deterministic "buffer" initialization matching the module __init__.
        self.alpha = jnp.asarray(alpha, dtype=jnp.float32)

    def __call__(self, x):
        return stacked_sigmoid_forward(x, self.alpha)


if __name__ == "__main__":
    key = jax.random.PRNGKey(0)
    module = StackedSigmoidJax(alpha=1.0)

    # Small NCHW-shaped activation tensor consistent with typical usage.
    # numel = 2*4*16*16 = 2048 -> pad-free lane-dense path.
    x = jax.random.normal(key, (2, 4, 16, 16), dtype=jnp.float32) * 3.0
    out = jax.block_until_ready(module(x))
    ref = jnp.round(x)
    assert out.shape == x.shape and out.dtype == x.dtype
    assert bool(jnp.all(out == ref))

    # Ragged-size fallback path (numel not a multiple of 128).
    key2 = jax.random.PRNGKey(0)
    y = jax.random.normal(key2, (3, 5, 7), dtype=jnp.float32) * 3.0
    out_y = jax.block_until_ready(module(y))
    ref_y = jnp.round(y)
    assert out_y.shape == y.shape and out_y.dtype == y.dtype
    assert bool(jnp.all(out_y == ref_y))

    print("KERNEL_OK")
</pallas_src>

<mosaic_0001>
module attributes {stable_mosaic.version = 11 : i64} {
  func.func @_round_kernel(%arg0: i32, %arg1: memref<8x256xf32, #tpu.memory_space<vmem>>, %arg2: memref<8x256xf32, #tpu.memory_space<vmem>>) attributes {dimension_semantics = [#tpu.dimension_semantics<parallel>], iteration_bounds = array<i64: 1>, scalar_prefetch = 0 : i64, scratch_operands = 0 : i64, tpu.core_type = #tpu.core_type<tc>, window_params = [{transform_indices = @transform_0, window_bounds = array<i64: 8, 256>}, {transform_indices = @transform_1, window_bounds = array<i64: 8, 256>}]} {
    %c0 = arith.constant 0 : index
    %c0_0 = arith.constant 0 : index
    %0 = vector.load %arg1[%c0, %c0_0] : memref<8x256xf32, #tpu.memory_space<vmem>>, vector<8x256xf32>
    %1 = math.roundeven %0 : vector<8x256xf32>
    %c0_1 = arith.constant 0 : index
    %c0_2 = arith.constant 0 : index
    %2 = vector.load %arg2[%c0_1, %c0_2] : memref<8x256xf32, #tpu.memory_space<vmem>>, vector<8x256xf32>
    tpu.vector_store %arg2[%c0_1, %c0_2], %1 {strides = array<i32>} : memref<8x256xf32, #tpu.memory_space<vmem>>, vector<8x256xf32>,
    return
  }
  func.func @transform_0(%arg0: i32) -> (i32, i32) {
    %c0_i32 = arith.constant 0 : i32
    %c0_i32_0 = arith.constant 0 : i32
    return %arg0, %c0_i32 : i32, i32
  }
  func.func @transform_1(%arg0: i32) -> (i32, i32) {
    %c0_i32 = arith.constant 0 : i32
    %c0_i32_0 = arith.constant 0 : i32
    return %arg0, %c0_i32 : i32, i32
  }
}

</mosaic_0001>

<bundles_post_ra>
// kernel: tpu_custom_call.1
= control target key start
LH: loop header
LB: loop body
LE: loop exit
PB: predicated region body
PF: predicated region fallthrough
CT: control target
= control target key end

     0   :  { %6 = vsyncpa [#allocation3], 0  ;;  %s130_s0 = inlined_call_operand.hbm [shape: f32[8,256], index: 0, kind: input, shape index: {}, may-alias: {0,1}]   ;;  %s131_s1 = inlined_call_operand.hbm [shape: f32[8,256], index: 1, kind: output, shape index: {}, may-alias: {0,1}]  }
   0x1   :  { %7 = vsyncpa [#allocation4], 0  ;;  %s94_s6 = smov [#allocation2]   ;;  %s46_s10 = scalar_lea.hbm %s130_s0, 256 }
   0x2   :  { %s14_s7 = sshll.u32 %s94_s6, 4  ;;  %p47_p0 = scmp.ne.s32.totalorder %s130_s0, %s46_s10  ;;  %s15_s7 = int_to_ptr.vmem [resolvable:$true] %s14_s7 }
   0x3   :  { %p50_p1 = scmp.lt.u32.totalorder %s46_s10, %s130_s0 }
   0x5   :  { %p52_p2 = pnand %p50_p1, %p47_p0 }
   0x7   :  { %55 = shalt.err (!%p52_p2)
}
   0x8   :  { %s56_s15 = scalar_lea.vmem %s15_s7, 256  ;;  %p61_p4 = scmp.lt.s32.totalorder %s15_s7, %s15_s7 }
   0x9   :  { %p57_p3 = scmp.ne.s32.totalorder %s15_s7, %s56_s15  ;;  %p62_p5 = scmp.lt.s32.totalorder %s56_s15, %s56_s15 }
   0xb   :  { %p63_p6 = por %p62_p5, %p61_p4 }
   0xd   :  { %p64_p7 = pnand %p63_p6, %p57_p3 }
   0xf   :  { %67 = shalt.err (!%p64_p7)
}
  0x10   :  { %17 = dma.hbm_to_vmem [thread:$0]  %s130_s0, 256, %s15_s7, [#allocation3]  }
  0x11   :  { %90 = dma.done.wait [#allocation3], 256  }
  0x12   :  { %91 = vsyncadd [#allocation3], 4294967040  ;;  %s95_s18 = smov [#allocation5]   ;;  %v21_v0 = vld [vmem:[#allocation2] sm:$0xff]  ;;  %v22_v1 = vld [vmem:[#allocation2 + $0x8] sm:$0xff] }
  0x13   :  { %s33_s19 = sshll.u32 %s95_s18, 4  ;;  %v42_v2 = vround.rtne.f32 %v21_v0  ;;  %v43_v3 = vround.rtne.f32 %v22_v1  ;;  %s34_s19 = int_to_ptr.vmem [resolvable:$true] %s33_s19 }
  0x14   :  { %s68_s20 = scalar_lea.vmem %s34_s19, 256  ;;  %p73_p9 = scmp.lt.s32.totalorder %s34_s19, %s34_s19 }
  0x15   :  { %25 = vst [vmem:[#allocation5] sm:$0xff] %v42_v2  ;;  %26 = vst [vmem:[#allocation5 + $0x8] sm:$0xff] %v43_v3  ;;  %p69_p8 = scmp.ne.s32.totalorder %s34_s19, %s68_s20  ;;  %p74_p10 = scmp.lt.s32.totalorder %s68_s20, %s68_s20 }
  0x17   :  { %p75_p11 = por %p74_p10, %p73_p9 }
  0x19   :  { %p76_p12 = pnand %p75_p11, %p69_p8 }
  0x1b   :  { %79 = shalt.err (!%p76_p12)
}
  0x1c   :  { %s80_s22 = scalar_lea.hbm %s131_s1, 256 }
  0x1d   :  { %p81_p13 = scmp.ne.s32.totalorder %s131_s1, %s80_s22  ;;  %p84_p0 = scmp.lt.u32.totalorder %s80_s22, %s131_s1 }
  0x1f   :  { %p86_p1 = pnand %p84_p0, %p81_p13 }
  0x21   :  { %89 = shalt.err (!%p86_p1)
}
  0x22   :  { %36 = dma.vmem_to_hbm [thread:$0]  %s34_s19, 256, %s131_s1, [#allocation4]  }
  0x23   :  { %92 = dma.done.wait [#allocation4], 256  }
  0x24   :  { %93 = vsyncadd [#allocation4], 4294967040 }
  0x25   :  { %40 = vsyncpa [#allocation3], 1 }
  0x26   :  { %41 = vsyncpa [#allocation4], 1 }

</bundles_post_ra>
